<compile_context>
chip_gen: v6e
topology: v6e:2x2x1
jax: 0.10.0
libtpu: 0.0.40
codegen_flags: <defaults>
</compile_context>

<pallas_src>
import math
import functools

import jax
import jax.numpy as jnp
from jax.experimental import pallas as pl
from jax.experimental.pallas import tpu as pltpu

_LANES = 128                      # vreg lane width
_VMEM_BUDGET_BYTES = 24 << 20     # conservative: fits the 32 MiB scoped default (v6e/v7x)


def _pick_batch_tile(batch: int, bytes_per_row: int, fixed_bytes: int) -> int:
    """Batch tile (multiple of 8 sublanes).  `batch` must be a multiple of 8.

    Capped at 1024 rows (~86% of HBM roofline per measured tiled-elementwise
    data), forced to give at least two grid steps when batch >= 16 (so both
    v7x TensorCores get work), and shrunk until the per-step buffers fit the
    VMEM budget.
    """
    tb = min(batch, 1024)
    if batch >= 16:
        tb = min(tb, max(8, (batch // 2) // 8 * 8))   # guarantee >= 2 grid steps
    tb = max(8, tb // 8 * 8)
    while tb > 8 and tb * bytes_per_row + fixed_bytes > _VMEM_BUDGET_BYTES:
        tb -= 8
    return tb


def _pad_batch(x):
    """Pad the batch dim up to a multiple of 8 (sublane rule); <= 7 extra rows."""
    b = x.shape[0]
    bp = (b + 7) // 8 * 8
    if bp == b:
        return x, b
    return jnp.pad(x, ((0, bp - b), (0, 0))), b


def prepare_params(wq, bq, wk, bk, wv, bv):
    """One-time re-layout of the torch-layout Linear params.

    Call once at parameter-load time: the transpose / concat / pad here is
    hoisted out of the per-call wrapper so it is not re-executed (as separate
    XLA ops) on every forward.
    """
    f = wv.shape[0]
    fa = (f + _LANES - 1) // _LANES * _LANES          # 128-aligned segment width
    wv_t = jnp.asarray(wv, jnp.float32).T             # (F, F): o = x @ Wv^T
    bv_row = jnp.asarray(bv, jnp.float32).reshape(1, f)
    # Fused QKV weight for the flag-gated full path; each segment is padded to
    # a 128-lane boundary so the in-kernel Q/K/V slices are free views.
    wqkv = jnp.zeros((f, 3 * fa), jnp.float32)
    wqkv = wqkv.at[:, 0 * fa:0 * fa + f].set(jnp.asarray(wq, jnp.float32).T)
    wqkv = wqkv.at[:, 1 * fa:1 * fa + f].set(jnp.asarray(wk, jnp.float32).T)
    wqkv = wqkv.at[:, 2 * fa:2 * fa + f].set(wv_t)
    bqkv = jnp.zeros((1, 3 * fa), jnp.float32)
    bqkv = bqkv.at[:, 0 * fa:0 * fa + f].set(jnp.asarray(bq, jnp.float32))
    bqkv = bqkv.at[:, 1 * fa:1 * fa + f].set(jnp.asarray(bk, jnp.float32))
    bqkv = bqkv.at[:, 2 * fa:2 * fa + f].set(jnp.asarray(bv, jnp.float32))
    return {"f": f, "fa": fa, "wv_t": wv_t, "bv": bv_row, "wqkv": wqkv, "bqkv": bqkv}


def _value_only_kernel(x_ref, wv_ref, bv_ref, o_ref):
    # softmax over the size-1 attention axis is exactly 1.0, so the module's
    # forward is o = x @ Wv^T + bv.  Output is stored at its natural (TB, F)
    # width: the kernel is memory-bound, so unpadded writeback wins over
    # avoiding a masked store.
    o_ref[...] = (
        jnp.dot(x_ref[...], wv_ref[...], preferred_element_type=jnp.float32)
        + bv_ref[...]
    ).astype(o_ref.dtype)


def _full_path_kernel(inv_scale, f, fa, x_ref, wqkv_ref, bqkv_ref, o_ref):
    # Flag-gated literal path: one fused QKV matmul, then the (degenerate,
    # size-1) score/softmax arithmetic, kept for parity checks.  Segments are
    # 128-lane aligned so the slices below never cross a vreg tile; padded
    # lanes of Q/K are exactly zero and do not perturb the score.
    x = x_ref[...]                                                    # (TB, F)
    qkv = (jnp.dot(x, wqkv_ref[...], preferred_element_type=jnp.float32)
           + bqkv_ref[...])                                           # (TB, 3*Fa)
    q = qkv[:, 0 * fa:1 * fa]
    k = qkv[:, 1 * fa:2 * fa]
    v = qkv[:, 2 * fa:2 * fa + f]                   # slice starts on a 128 boundary

    s = jnp.sum(q * k, axis=-1, keepdims=True) * inv_scale            # (TB, 1)
    p = jnp.exp(s - jnp.max(s, axis=-1, keepdims=True))
    p = p * pl.reciprocal(jnp.sum(p, axis=-1, keepdims=True), approx=False)
    o_ref[...] = (p * v).astype(o_ref.dtype)


def self_attention(x, params, *, use_full_path: bool = False):
    """Forward of the PyTorch SelfAttention module.

    x: (B, F) float32; params: output of prepare_params() (pre-laid-out weights).
    """
    f = params["f"]
    x_p, b = _pad_batch(x)
    bp = x_p.shape[0]
    compiler_params = pltpu.CompilerParams(dimension_semantics=("parallel",))

    if not use_full_path:
        wv_t, bv = params["wv_t"], params["bv"]
        fixed = (wv_t.size + bv.size) * 4            # grid-invariant weight/bias bytes
        tb = _pick_batch_tile(bp, 2 * (f + f) * 4, fixed)
        # NOTE: for large production F, the grid-invariant weight block should be
        # single-buffered and/or K/N-tiled with a VMEM f32 accumulator; at F=32 it
        # is a few KiB and irrelevant.
        out = pl.pallas_call(
            _value_only_kernel,
            out_shape=jax.ShapeDtypeStruct((bp, f), jnp.float32),
            grid_spec=pltpu.PrefetchScalarGridSpec(
                num_scalar_prefetch=0,
                grid=(pl.cdiv(bp, tb),),
                in_specs=[
                    pl.BlockSpec((tb, f), lambda i: (i, 0)),   # x
                    pl.BlockSpec((f, f), lambda i: (0, 0)),    # Wv^T (grid-invariant)
                    pl.BlockSpec((1, f), lambda i: (0, 0)),    # bv   (grid-invariant)
                ],
                out_specs=pl.BlockSpec((tb, f), lambda i: (i, 0)),
            ),
            compiler_params=compiler_params,
        )(x_p, wv_t, bv)
        return out if bp == b else out[:b]

    # Full (flag-gated) path: fused, 128-lane-aligned QKV weight (F, 3*Fa) + bias.
    fa = params["fa"]
    wqkv, bqkv = params["wqkv"], params["bqkv"]
    inv_scale = 1.0 / math.sqrt(float(f))
    fixed = (wqkv.size + bqkv.size) * 4
    # per-row VMEM: double-buffered x + out rows, plus the single qkv intermediate
    tb = _pick_batch_tile(bp, 2 * (f + f) * 4 + 3 * fa * 4, fixed)
    kernel = functools.partial(_full_path_kernel, inv_scale, f, fa)
    out = pl.pallas_call(
        kernel,
        out_shape=jax.ShapeDtypeStruct((bp, f), jnp.float32),
        grid_spec=pltpu.PrefetchScalarGridSpec(
            num_scalar_prefetch=0,
            grid=(pl.cdiv(bp, tb),),
            in_specs=[
                pl.BlockSpec((tb, f), lambda i: (i, 0)),        # x
                pl.BlockSpec((f, 3 * fa), lambda i: (0, 0)),    # [Wq^T|pad|Wk^T|pad|Wv^T|pad]
                pl.BlockSpec((1, 3 * fa), lambda i: (0, 0)),    # [bq |pad| bk |pad| bv |pad]
            ],
            out_specs=pl.BlockSpec((tb, f), lambda i: (i, 0)),
        ),
        compiler_params=compiler_params,
    )(x_p, wqkv, bqkv)
    return out if bp == b else out[:b]


def _reference(x, wq, bq, wk, bk, wv, bv):
    """Pure-JAX transcription of the PyTorch forward."""
    q = x @ wq.T + bq
    k = x @ wk.T + bk
    v = x @ wv.T + bv
    s = jnp.sum(q * k, axis=-1, keepdims=True) / jnp.sqrt(jnp.float32(x.shape[1]))
    p = jax.nn.softmax(s, axis=-1)   # size-1 softmax -> ones
    return p * v


if __name__ == "__main__":
    feature_dim = 32
    batch = 8

    key = jax.random.PRNGKey(0)
    kx, kq, kbq, kk, kbk, kv, kbv = jax.random.split(key, 7)

    bound = 1.0 / math.sqrt(feature_dim)  # nn.Linear default init range
    x = jax.random.normal(kx, (batch, feature_dim), dtype=jnp.float32)
    wq = jax.random.uniform(kq, (feature_dim, feature_dim), jnp.float32, -bound, bound)
    bq = jax.random.uniform(kbq, (feature_dim,), jnp.float32, -bound, bound)
    wk = jax.random.uniform(kk, (feature_dim, feature_dim), jnp.float32, -bound, bound)
    bk = jax.random.uniform(kbk, (feature_dim,), jnp.float32, -bound, bound)
    wv = jax.random.uniform(kv, (feature_dim, feature_dim), jnp.float32, -bound, bound)
    bv = jax.random.uniform(kbv, (feature_dim,), jnp.float32, -bound, bound)

    # One-time weight re-layout (hoisted out of the per-call wrapper).
    params = prepare_params(wq, bq, wk, bk, wv, bv)
    ref = _reference(x, wq, bq, wk, bk, wv, bv)

    # Fast (default) path: value-only projection, natural (B, F) output.
    out_fast = jax.block_until_ready(self_attention(x, params))
    assert out_fast.shape == (batch, feature_dim)
    assert jnp.allclose(out_fast, ref, atol=1e-5, rtol=1e-5), "fast path mismatch"

    # Ragged-batch robustness check (B not a multiple of 8 -> padded, grid of 2).
    x13 = jax.random.normal(kx, (13, feature_dim), dtype=jnp.float32)
    out13 = jax.block_until_ready(self_attention(x13, params))
    assert out13.shape == (13, feature_dim)
    assert jnp.allclose(out13, _reference(x13, wq, bq, wk, bk, wv, bv),
                        atol=1e-5, rtol=1e-5), "ragged-batch mismatch"

    # Flag-gated full path (fused, 128-aligned QKV + size-1 softmax), parity only.
    out_full = jax.block_until_ready(
        self_attention(x, params, use_full_path=True))
    assert out_full.shape == (batch, feature_dim)
    assert jnp.allclose(out_full, ref, atol=1e-5, rtol=1e-5), "full path mismatch"

    print("KERNEL_OK")
</pallas_src>

<mosaic_0001>
module attributes {stable_mosaic.version = 11 : i64} {
  func.func @_value_only_kernel(%arg0: i32, %arg1: memref<8x32xf32, #tpu.memory_space<vmem>>, %arg2: memref<32x32xf32, #tpu.memory_space<vmem>>, %arg3: memref<1x32xf32, #tpu.memory_space<vmem>>, %arg4: memref<8x32xf32, #tpu.memory_space<vmem>>) attributes {dimension_semantics = [#tpu.dimension_semantics<parallel>], iteration_bounds = array<i64: 1>, scalar_prefetch = 0 : i64, scratch_operands = 0 : i64, tpu.core_type = #tpu.core_type<tc>, window_params = [{transform_indices = @transform_0, window_bounds = array<i64: 8, 32>}, {pipeline_mode = #tpu.pipeline_mode<synchronous>, transform_indices = @transform_1, window_bounds = array<i64: 32, 32>}, {pipeline_mode = #tpu.pipeline_mode<synchronous>, transform_indices = @transform_2, window_bounds = array<i64: 1, 32>}, {transform_indices = @transform_3, window_bounds = array<i64: 8, 32>}]} {
    %c0 = arith.constant 0 : index
    %c0_0 = arith.constant 0 : index
    %0 = vector.load %arg1[%c0, %c0_0] : memref<8x32xf32, #tpu.memory_space<vmem>>, vector<8x32xf32>
    %c0_1 = arith.constant 0 : index
    %c0_2 = arith.constant 0 : index
    %1 = vector.load %arg2[%c0_1, %c0_2] : memref<32x32xf32, #tpu.memory_space<vmem>>, vector<32x32xf32>
    %cst = arith.constant dense<0.000000e+00> : vector<8x32xf32>
    %2 = tpu.matmul %0, %1, %cst {dimension_numbers = #tpu.dot_dimension_numbers<[1], [0], [0], [1], [0, 0, 1, 1], [], []>} : vector<8x32xf32>, vector<32x32xf32>, vector<8x32xf32> -> vector<8x32xf32>
    %c0_3 = arith.constant 0 : index
    %c0_4 = arith.constant 0 : index
    %3 = vector.load %arg3[%c0_3, %c0_4] : memref<1x32xf32, #tpu.memory_space<vmem>>, vector<1x32xf32>
    %4 = vector.broadcast %3 : vector<1x32xf32> to vector<8x32xf32>
    %5 = arith.addf %2, %4 : vector<8x32xf32>
    %c0_5 = arith.constant 0 : index
    %c0_6 = arith.constant 0 : index
    %6 = vector.load %arg4[%c0_5, %c0_6] : memref<8x32xf32, #tpu.memory_space<vmem>>, vector<8x32xf32>
    tpu.vector_store %arg4[%c0_5, %c0_6], %5 {strides = array<i32>} : memref<8x32xf32, #tpu.memory_space<vmem>>, vector<8x32xf32>,
    return
  }
  func.func @transform_0(%arg0: i32) -> (i32, i32) {
    %c0_i32 = arith.constant 0 : i32
    %c0_i32_0 = arith.constant 0 : i32
    return %arg0, %c0_i32 : i32, i32
  }
  func.func @transform_1(%arg0: i32) -> (i32, i32) {
    %c0_i32 = arith.constant 0 : i32
    %c0_i32_0 = arith.constant 0 : i32
    %c0_i32_1 = arith.constant 0 : i32
    return %c0_i32, %c0_i32_0 : i32, i32
  }
  func.func @transform_2(%arg0: i32) -> (i32, i32) {
    %c0_i32 = arith.constant 0 : i32
    %c0_i32_0 = arith.constant 0 : i32
    %c0_i32_1 = arith.constant 0 : i32
    return %c0_i32, %c0_i32_0 : i32, i32
  }
  func.func @transform_3(%arg0: i32) -> (i32, i32) {
    %c0_i32 = arith.constant 0 : i32
    %c0_i32_0 = arith.constant 0 : i32
    return %arg0, %c0_i32 : i32, i32
  }
}

</mosaic_0001>

<bundles_post_ra>
// kernel: tpu_custom_call.1
= control target key start
LH: loop header
LB: loop body
LE: loop exit
PB: predicated region body
PF: predicated region fallthrough
CT: control target
= control target key end

     0   :  { %8 = vsyncpa [#allocation3], 0  ;;  %s274_s0 = inlined_call_operand.hbm [shape: f32[8,32], index: 0, kind: input, shape index: {}]   ;;  %s275_s1 = inlined_call_operand.hbm [shape: f32[32,32], index: 1, kind: input, shape index: {}]   ;;  %s276_s2 = inlined_call_operand.vmem [shape: f32[1,32], index: 2, kind: input, shape index: {}]   ;;  %s277_s3 = inlined_call_operand.hbm [shape: f32[8,32], index: 3, kind: output, shape index: {}]  }
   0x1   :  { %9 = vsyncpa [#allocation6], 0 }
   0x2   :  { %10 = vsyncpa [#allocation4], 0  ;;  %s235_s12 = smov [#allocation2]   ;;  %s236_s14 = smov [#allocation5]  }
   0x3   :  { %s17_s13 = sshll.u32 %s235_s12, 4  ;;  %s26_s15 = sshll.u32 %s236_s14, 4  ;;  %s18_s13 = int_to_ptr.vmem [resolvable:$true] %s17_s13  ;;  %s27_s15 = int_to_ptr.vmem [resolvable:$true] %s26_s15 }
   0x4   :  { %s177_s16 = scalar_lea.vmem %s18_s13, 128  ;;  %p182_p1 = scmp.lt.s32.totalorder %s18_s13, %s18_s13 }
   0x5   :  { %p178_p0 = scmp.ne.s32.totalorder %s18_s13, %s177_s16  ;;  %p183_p2 = scmp.lt.s32.totalorder %s177_s16, %s177_s16 }
   0x7   :  { %p184_p3 = por %p183_p2, %p182_p1 }
   0x9   :  { %p185_p4 = pnand %p184_p3, %p178_p0 }
   0xb   :  { %188 = shalt.err (!%p185_p4)
}
   0xc   :  { %20 = dma.hbm_to_vmem [thread:$0]  %s274_s0, 128, %s18_s13, [#allocation3]  }
   0xd   :  { %s197_s19 = scalar_lea.vmem %s27_s15, 512  ;;  %p202_p6 = scmp.lt.s32.totalorder %s27_s15, %s27_s15 }
   0xe   :  { %p198_p5 = scmp.ne.s32.totalorder %s27_s15, %s197_s19  ;;  %p203_p7 = scmp.lt.s32.totalorder %s197_s19, %s197_s19 }
  0x10   :  { %p204_p8 = por %p203_p7, %p202_p6 }
  0x12   :  { %p205_p9 = pnand %p204_p8, %p198_p5 }
  0x14   :  { %208 = shalt.err (!%p205_p9)
}
  0x15   :  { %s237_s20 = smov 128   ;;  %s238_s21 = smov 8  }
  0x16   :  { %32 = dma.hbm_to_vmem [thread:$0]  %s275_s1, 512, %s27_s15, [#allocation6], %s237_s20, %s237_s20, %s238_s21  }
  0x17   :  { %229 = dma.done.wait [#allocation3], 128  }
  0x18   :  { %230 = vsyncadd [#allocation3], 4294967168 }
  0x19   :  { %231 = dma.done.wait [#allocation6], 512  }
  0x1a   :  { %232 = vsyncadd [#allocation6], 4294966784  ;;  %v239_v0 = vmov 0.0   ;;  %vm240_vm0 = vmmov 0   ;;  %v45_v1 = vld [vmem:[#allocation5 + $0x18] sm:$0xff]  ;;  %v44_v2 = vld [vmem:[#allocation5 + $0x10] sm:$0xff] }
  0x1b   :  { %151 = vmatprep.subr.mxu0 %v239_v0  ;;  %159 = vmatprep.mubr.msk.f32.mxu0 %vm240_vm0, %v239_v0  ;;  %v43_v3 = vld [vmem:[#allocation5 + $0x8] sm:$0xff]  ;;  %v42_v4 = vld [vmem:[#allocation5] sm:$0xff]  ;;  %v41_v5 = vld [vmem:[#allocation2] sm:$0xff]  ;;  %vm53_vm1 = vcmask 261120   ;;  %s241_s24 = smov [#allocation7]  }
  0x1c   :  { %152 = vmatpush3.msra.mxu0 %v45_v1  ;;  %v144_v6 = vld [vmem:[%s276_s2] ss:$0 sm:$0xff]  ;;  %s134_s25 = sshll.u32 %s241_s24, 4  ;;  %s135_s25 = int_to_ptr.vmem [resolvable:$true] %s134_s25 }
  0x1d   :  { %153 = vmatprep.subr.mxu0 %v239_v0  ;;  %s209_s26 = scalar_lea.vmem %s135_s25, 128  ;;  %p214_p11 = scmp.lt.s32.totalorder %s135_s25, %s135_s25 }
  0x1e   :  { %154 = vmatpush3.msra.mxu0 %v44_v2  ;;  %p210_p10 = scmp.ne.s32.totalorder %s135_s25, %s209_s26  ;;  %p215_p12 = scmp.lt.s32.totalorder %s209_s26, %s209_s26 }
  0x1f   :  { %155 = vmatprep.subr.mxu0 %v239_v0 }
  0x20   :  { %156 = vmatpush3.msra.mxu0 %v43_v3  ;;  %p216_p13 = por %p215_p12, %p214_p11 }
  0x21   :  { %157 = vmatprep.subr.mxu0 %v239_v0 }
  0x22   :  { %158 = vmatpush3.msra.mxu0 %v42_v4  ;;  %p217_p0 = pnand %p216_p13, %p210_p10 }
  0x23   :  { %160 = vmatmul.mubr.msk.f32.vlgmr.msra.gmra.mxu0 %vm53_vm1, %v41_v5 }
  0xe3   :  { %v123_v7 = vpop.f32.mrf.mxu0 }
  0xe4   :  { %v124_v8 = vadd.f32 %v144_v6, %v123_v7 }
  0xe5   :  { %v161_v9 = vpop.f32.mrf.mxu0 }
  0xe6   :  { %127 = vst.msk [vmem:[#allocation7] sm:$0xff] %vm53_vm1, %v124_v8 }
  0xe7   :  { %220 = shalt.err (!%p217_p0)
}
  0xe8   :  { %137 = dma.vmem_to_hbm [thread:$0]  %s135_s25, 128, %s277_s3, [#allocation4]  }
  0xe9   :  { %233 = dma.done.wait [#allocation4], 128  }
  0xea   :  { %234 = vsyncadd [#allocation4], 4294967168 }
  0xeb   :  { %141 = vsyncpa [#allocation3], 1 }
  0xec   :  { %142 = vsyncpa [#allocation6], 1 }
  0xed   :  { %143 = vsyncpa [#allocation4], 1 }

</bundles_post_ra>
